<compile_context>
chip_gen: v5e
topology: v5e:2x2
jax: 0.10.0
libtpu: 0.0.40
codegen_flags: <defaults>
</compile_context>

<pallas_src>
import jax
import jax.numpy as jnp
from jax.experimental import pallas as pl
from jax.experimental.pallas import tpu as pltpu

_NEG_SLOPE = 0.01  # F.leaky_relu default negative_slope


def _leaky_relu(v):
    return jnp.where(v > 0, v, _NEG_SLOPE * v)


# ----------------------------------------------------------------------------
# Kernel
# ----------------------------------------------------------------------------
def transition_network_kernel(x_ref, a_ref, w1x_ref, wstack_ref, wa_all_ref,
                              b_all_ref, out_ref):
    H = out_ref.shape[-1]
    x = x_ref[...].astype(jnp.float32)
    a = a_ref[...].astype(jnp.float32)

    # One wide matmul covers every action-path contribution AND all biases:
    #   c[:, k*H:(k+1)*H] = a @ Wa_k + b_k   for the k-th Linear (k = 0..5).
    c = (jnp.dot(a, wa_all_ref[...].astype(jnp.float32),
                 preferred_element_type=jnp.float32)
         + b_all_ref[...])

    def pre(k):                               # static lane slice of c
        return c[:, k * H:(k + 1) * H]

    def dot(v, w):                            # state-path MXU matmul
        return jnp.dot(v, w.astype(jnp.float32),
                       preferred_element_type=jnp.float32)

    # dense1 + leaky_relu
    h = _leaky_relu(dot(x, w1x_ref[...]) + pre(0))

    # residual block 1
    r = _leaky_relu(dot(h, wstack_ref[0]) + pre(1))
    r = dot(r, wstack_ref[1]) + pre(2)
    h = h + r

    # residual block 2
    r = _leaky_relu(dot(h, wstack_ref[2]) + pre(3))
    r = dot(r, wstack_ref[3]) + pre(4)
    h = h + r

    # final dense2 (no activation)
    out_ref[...] = (dot(h, wstack_ref[4]) + pre(5)).astype(out_ref.dtype)


# ----------------------------------------------------------------------------
# One-time parameter packing (hoisted out of the per-call wrapper)
# ----------------------------------------------------------------------------
def prepare_transition_params(params, rep_dim):
    """Pack TransitionNetwork weights for the fused kernel.

    `params` holds concatenated-input weights stored (in_features, out_features):
      w1 (R+A, H), w11/w12/w21/w22/w2 (H+A, H), biases b* (H,).

    Returns:
      w1x    (R, H)      state-path weight of dense1
      wstack (5, H, H)   state-path weights of [rb1.d1, rb1.d2, rb2.d1, rb2.d2, dense2]
      wa_all (A, 6H)     action-path weights of all six Linears, lane-packed
      b_all  (1, 6H)     all six biases, packed to match wa_all
    """
    H = params["b1"].shape[0]
    names = ["w1", "w11", "w12", "w21", "w22", "w2"]
    splits = [rep_dim, H, H, H, H, H]
    wx, wa = [], []
    for n, s in zip(names, splits):
        wx.append(params[n][:s])
        wa.append(params[n][s:])
    b_all = jnp.concatenate([params["b" + n[1:]] for n in names]).reshape(1, 6 * H)
    return {
        "w1x": wx[0],
        "wstack": jnp.stack(wx[1:], axis=0),
        "wa_all": jnp.concatenate(wa, axis=1),
        "b_all": b_all,
    }


# ----------------------------------------------------------------------------
# Wrapper
# ----------------------------------------------------------------------------
def _pick_batch_tile(B):
    """Rows per grid step: multiple of 8 (sublane), large enough to amortize
    per-step overhead, and (when B >= 16) >= 2 grid steps so v7x's two
    TensorCores both get work.  Capped at 512 rows / tile."""
    if B <= 8:
        return B
    half = -(-B // 2)                   # ceil(B / 2)
    tb = -(-half // 8) * 8              # round up to a multiple of 8
    return min(tb, 512)


def transition_network(prepared, x, a):
    """prepared = prepare_transition_params(...); x: (B, R); a: (B, A)."""
    B, R = x.shape
    B2, A = a.shape
    assert B == B2
    H = prepared["b_all"].shape[-1] // 6

    TB = _pick_batch_tile(B)
    B_pad = ((B + TB - 1) // TB) * TB
    if B_pad != B:
        # Ragged batch: zero-pad rows (results sliced off below).
        x = jnp.pad(x, ((0, B_pad - B), (0, 0)))
        a = jnp.pad(a, ((0, B_pad - B), (0, 0)))

    grid = (B_pad // TB,)
    batch_map = lambda i: (i, 0)

    in_specs = [
        pl.BlockSpec((TB, R), batch_map),
        pl.BlockSpec((TB, A), batch_map),
        # Constant-index blocks: weights/biases stay VMEM-resident across tiles.
        pl.BlockSpec(prepared["w1x"].shape, lambda i: (0, 0)),
        pl.BlockSpec(prepared["wstack"].shape, lambda i: (0, 0, 0)),
        pl.BlockSpec(prepared["wa_all"].shape, lambda i: (0, 0)),
        pl.BlockSpec(prepared["b_all"].shape, lambda i: (0, 0)),
    ]

    # Advisory cost so XLA does not treat the call as opaque.
    flops = 2 * B_pad * (R * H + 5 * H * H + A * 6 * H)
    bytes_accessed = 4 * (B_pad * (R + A + H)      # x, a, out
                          + R * H + 5 * H * H      # state-path weights
                          + A * 6 * H + 6 * H)     # packed action weights + biases

    out = pl.pallas_call(
        transition_network_kernel,
        out_shape=jax.ShapeDtypeStruct((B_pad, H), jnp.float32),
        grid=grid,
        in_specs=in_specs,
        out_specs=pl.BlockSpec((TB, H), batch_map),
        compiler_params=pltpu.CompilerParams(
            dimension_semantics=("parallel",)),
        cost_estimate=pl.CostEstimate(
            flops=flops, transcendentals=0, bytes_accessed=bytes_accessed),
    )(x, a, prepared["w1x"], prepared["wstack"], prepared["wa_all"],
      prepared["b_all"])

    return out[:B] if B_pad != B else out


# ----------------------------------------------------------------------------
# Pure-JAX reference (mirrors the PyTorch forward, with concatenation)
# ----------------------------------------------------------------------------
def transition_network_ref(params, x, a):
    hp = jax.lax.Precision.HIGHEST
    linear = lambda v, w, b: jnp.dot(v, w, precision=hp) + b
    lrelu = lambda v: jnp.where(v > 0, v, _NEG_SLOPE * v)

    h = lrelu(linear(jnp.concatenate([x, a], -1), params["w1"], params["b1"]))
    # residual block 1
    r = lrelu(linear(jnp.concatenate([h, a], -1), params["w11"], params["b11"]))
    r = linear(jnp.concatenate([r, a], -1), params["w12"], params["b12"])
    h = h + r
    # residual block 2
    r = lrelu(linear(jnp.concatenate([h, a], -1), params["w21"], params["b21"]))
    r = linear(jnp.concatenate([r, a], -1), params["w22"], params["b22"])
    h = h + r
    return linear(jnp.concatenate([h, a], -1), params["w2"], params["b2"])


def _init_linear(key, fan_in, fan_out):
    # torch.nn.Linear default init U(-1/sqrt(fan_in), 1/sqrt(fan_in)),
    # stored as (in_features, out_features) so the kernel needs no transpose.
    kw, kb = jax.random.split(key)
    bound = 1.0 / float(fan_in) ** 0.5
    w = jax.random.uniform(kw, (fan_in, fan_out), jnp.float32, -bound, bound)
    b = jax.random.uniform(kb, (fan_out,), jnp.float32, -bound, bound)
    return w, b


if __name__ == "__main__":
    key = jax.random.PRNGKey(0)
    B, R, A, H = 8, 32, 4, 32   # batch=8, rep_dim=32, action_dim=4, hidden=32

    keys = jax.random.split(key, 8)
    params = {}
    params["w1"], params["b1"] = _init_linear(keys[0], R + A, H)
    params["w11"], params["b11"] = _init_linear(keys[1], H + A, H)
    params["w12"], params["b12"] = _init_linear(keys[2], H + A, H)
    params["w21"], params["b21"] = _init_linear(keys[3], H + A, H)
    params["w22"], params["b22"] = _init_linear(keys[4], H + A, H)
    params["w2"], params["b2"] = _init_linear(keys[5], H + A, H)

    x = jax.random.normal(keys[6], (B, R), jnp.float32)
    a = jax.random.uniform(keys[7], (B, A), jnp.float32, -1.0, 1.0)

    prepared = prepare_transition_params(params, R)   # one-time packing
    out = transition_network(prepared, x, a)
    out = jax.block_until_ready(out)

    ref = transition_network_ref(params, x, a)
    assert out.shape == (B, H)
    assert jnp.allclose(out, ref, atol=1e-4, rtol=1e-4), float(
        jnp.max(jnp.abs(out - ref)))

    print("KERNEL_OK")
</pallas_src>

<mosaic_0001>
module attributes {stable_mosaic.version = 11 : i64} {
  func.func @transition_network_kernel(%arg0: i32, %arg1: memref<8x32xf32, #tpu.memory_space<vmem>>, %arg2: memref<8x4xf32, #tpu.memory_space<vmem>>, %arg3: memref<32x32xf32, #tpu.memory_space<vmem>>, %arg4: memref<5x32x32xf32, #tpu.memory_space<vmem>>, %arg5: memref<4x192xf32, #tpu.memory_space<vmem>>, %arg6: memref<1x192xf32, #tpu.memory_space<vmem>>, %arg7: memref<8x32xf32, #tpu.memory_space<vmem>>) attributes {dimension_semantics = [#tpu.dimension_semantics<parallel>], iteration_bounds = array<i64: 1>, scalar_prefetch = 0 : i64, scratch_operands = 0 : i64, tpu.core_type = #tpu.core_type<tc>, window_params = [{transform_indices = @transform_0, window_bounds = array<i64: 8, 32>}, {transform_indices = @transform_1, window_bounds = array<i64: 8, 4>}, {pipeline_mode = #tpu.pipeline_mode<synchronous>, transform_indices = @transform_2, window_bounds = array<i64: 32, 32>}, {pipeline_mode = #tpu.pipeline_mode<synchronous>, transform_indices = @transform_3, window_bounds = array<i64: 5, 32, 32>}, {pipeline_mode = #tpu.pipeline_mode<synchronous>, transform_indices = @transform_4, window_bounds = array<i64: 4, 192>}, {pipeline_mode = #tpu.pipeline_mode<synchronous>, transform_indices = @transform_5, window_bounds = array<i64: 1, 192>}, {transform_indices = @transform_6, window_bounds = array<i64: 8, 32>}]} {
    %c0 = arith.constant 0 : index
    %c0_0 = arith.constant 0 : index
    %0 = vector.load %arg1[%c0, %c0_0] : memref<8x32xf32, #tpu.memory_space<vmem>>, vector<8x32xf32>
    %c0_1 = arith.constant 0 : index
    %c0_2 = arith.constant 0 : index
    %1 = vector.load %arg2[%c0_1, %c0_2] : memref<8x4xf32, #tpu.memory_space<vmem>>, vector<8x4xf32>
    %c0_3 = arith.constant 0 : index
    %c0_4 = arith.constant 0 : index
    %2 = vector.load %arg5[%c0_3, %c0_4] : memref<4x192xf32, #tpu.memory_space<vmem>>, vector<4x192xf32>
    %cst = arith.constant dense<0.000000e+00> : vector<8x192xf32>
    %3 = tpu.matmul %1, %2, %cst {dimension_numbers = #tpu.dot_dimension_numbers<[1], [0], [0], [1], [0, 0, 1, 1], [], []>} : vector<8x4xf32>, vector<4x192xf32>, vector<8x192xf32> -> vector<8x192xf32>
    %c0_5 = arith.constant 0 : index
    %c0_6 = arith.constant 0 : index
    %4 = vector.load %arg6[%c0_5, %c0_6] : memref<1x192xf32, #tpu.memory_space<vmem>>, vector<1x192xf32>
    %5 = vector.broadcast %4 : vector<1x192xf32> to vector<8x192xf32>
    %6 = arith.addf %3, %5 : vector<8x192xf32>
    %c0_7 = arith.constant 0 : index
    %c0_8 = arith.constant 0 : index
    %7 = vector.load %arg3[%c0_7, %c0_8] : memref<32x32xf32, #tpu.memory_space<vmem>>, vector<32x32xf32>
    %cst_9 = arith.constant dense<0.000000e+00> : vector<8x32xf32>
    %8 = tpu.matmul %0, %7, %cst_9 {dimension_numbers = #tpu.dot_dimension_numbers<[1], [0], [0], [1], [0, 0, 1, 1], [], []>} : vector<8x32xf32>, vector<32x32xf32>, vector<8x32xf32> -> vector<8x32xf32>
    %9 = vector.extract_strided_slice %6 {offsets = [0, 0], sizes = [8, 32], strides = [1, 1]} : vector<8x192xf32> to vector<8x32xf32>
    %10 = arith.addf %8, %9 : vector<8x32xf32>
    %cst_10 = arith.constant 0.000000e+00 : f32
    %11 = vector.broadcast %cst_10 : f32 to vector<8x32xf32>
    %12 = arith.cmpf ogt, %10, %11 : vector<8x32xf32>
    %cst_11 = arith.constant 0.00999999977 : f32
    %13 = vector.broadcast %cst_11 : f32 to vector<8x32xf32>
    %14 = arith.mulf %13, %10 : vector<8x32xf32>
    %15 = arith.select %12, %10, %14 : vector<8x32xi1>, vector<8x32xf32>
    %c0_12 = arith.constant 0 : index
    %c0_13 = arith.constant 0 : index
    %c0_14 = arith.constant 0 : index
    %16 = vector.load %arg4[%c0_12, %c0_13, %c0_14] : memref<5x32x32xf32, #tpu.memory_space<vmem>>, vector<1x32x32xf32>
    %17 = vector.shape_cast %16 : vector<1x32x32xf32> to vector<32x32xf32>
    %cst_15 = arith.constant dense<0.000000e+00> : vector<8x32xf32>
    %18 = tpu.matmul %15, %17, %cst_15 {dimension_numbers = #tpu.dot_dimension_numbers<[1], [0], [0], [1], [0, 0, 1, 1], [], []>} : vector<8x32xf32>, vector<32x32xf32>, vector<8x32xf32> -> vector<8x32xf32>
    %19 = vector.extract_strided_slice %6 {offsets = [0, 32], sizes = [8, 32], strides = [1, 1]} : vector<8x192xf32> to vector<8x32xf32>
    %20 = arith.addf %18, %19 : vector<8x32xf32>
    %cst_16 = arith.constant 0.000000e+00 : f32
    %21 = vector.broadcast %cst_16 : f32 to vector<8x32xf32>
    %22 = arith.cmpf ogt, %20, %21 : vector<8x32xf32>
    %cst_17 = arith.constant 0.00999999977 : f32
    %23 = vector.broadcast %cst_17 : f32 to vector<8x32xf32>
    %24 = arith.mulf %23, %20 : vector<8x32xf32>
    %25 = arith.select %22, %20, %24 : vector<8x32xi1>, vector<8x32xf32>
    %c1 = arith.constant 1 : index
    %c0_18 = arith.constant 0 : index
    %c0_19 = arith.constant 0 : index
    %26 = vector.load %arg4[%c1, %c0_18, %c0_19] : memref<5x32x32xf32, #tpu.memory_space<vmem>>, vector<1x32x32xf32>
    %27 = vector.shape_cast %26 : vector<1x32x32xf32> to vector<32x32xf32>
    %cst_20 = arith.constant dense<0.000000e+00> : vector<8x32xf32>
    %28 = tpu.matmul %25, %27, %cst_20 {dimension_numbers = #tpu.dot_dimension_numbers<[1], [0], [0], [1], [0, 0, 1, 1], [], []>} : vector<8x32xf32>, vector<32x32xf32>, vector<8x32xf32> -> vector<8x32xf32>
    %29 = vector.extract_strided_slice %6 {offsets = [0, 64], sizes = [8, 32], strides = [1, 1]} : vector<8x192xf32> to vector<8x32xf32>
    %30 = arith.addf %28, %29 : vector<8x32xf32>
    %31 = arith.addf %15, %30 : vector<8x32xf32>
    %c2 = arith.constant 2 : index
    %c0_21 = arith.constant 0 : index
    %c0_22 = arith.constant 0 : index
    %32 = vector.load %arg4[%c2, %c0_21, %c0_22] : memref<5x32x32xf32, #tpu.memory_space<vmem>>, vector<1x32x32xf32>
    %33 = vector.shape_cast %32 : vector<1x32x32xf32> to vector<32x32xf32>
    %cst_23 = arith.constant dense<0.000000e+00> : vector<8x32xf32>
    %34 = tpu.matmul %31, %33, %cst_23 {dimension_numbers = #tpu.dot_dimension_numbers<[1], [0], [0], [1], [0, 0, 1, 1], [], []>} : vector<8x32xf32>, vector<32x32xf32>, vector<8x32xf32> -> vector<8x32xf32>
    %35 = vector.extract_strided_slice %6 {offsets = [0, 96], sizes = [8, 32], strides = [1, 1]} : vector<8x192xf32> to vector<8x32xf32>
    %36 = arith.addf %34, %35 : vector<8x32xf32>
    %cst_24 = arith.constant 0.000000e+00 : f32
    %37 = vector.broadcast %cst_24 : f32 to vector<8x32xf32>
    %38 = arith.cmpf ogt, %36, %37 : vector<8x32xf32>
    %cst_25 = arith.constant 0.00999999977 : f32
    %39 = vector.broadcast %cst_25 : f32 to vector<8x32xf32>
    %40 = arith.mulf %39, %36 : vector<8x32xf32>
    %41 = arith.select %38, %36, %40 : vector<8x32xi1>, vector<8x32xf32>
    %c3 = arith.constant 3 : index
    %c0_26 = arith.constant 0 : index
    %c0_27 = arith.constant 0 : index
    %42 = vector.load %arg4[%c3, %c0_26, %c0_27] : memref<5x32x32xf32, #tpu.memory_space<vmem>>, vector<1x32x32xf32>
    %43 = vector.shape_cast %42 : vector<1x32x32xf32> to vector<32x32xf32>
    %cst_28 = arith.constant dense<0.000000e+00> : vector<8x32xf32>
    %44 = tpu.matmul %41, %43, %cst_28 {dimension_numbers = #tpu.dot_dimension_numbers<[1], [0], [0], [1], [0, 0, 1, 1], [], []>} : vector<8x32xf32>, vector<32x32xf32>, vector<8x32xf32> -> vector<8x32xf32>
    %45 = vector.extract_strided_slice %6 {offsets = [0, 128], sizes = [8, 32], strides = [1, 1]} : vector<8x192xf32> to vector<8x32xf32>
    %46 = arith.addf %44, %45 : vector<8x32xf32>
    %47 = arith.addf %31, %46 : vector<8x32xf32>
    %c4 = arith.constant 4 : index
    %c0_29 = arith.constant 0 : index
    %c0_30 = arith.constant 0 : index
    %48 = vector.load %arg4[%c4, %c0_29, %c0_30] : memref<5x32x32xf32, #tpu.memory_space<vmem>>, vector<1x32x32xf32>
    %49 = vector.shape_cast %48 : vector<1x32x32xf32> to vector<32x32xf32>
    %cst_31 = arith.constant dense<0.000000e+00> : vector<8x32xf32>
    %50 = tpu.matmul %47, %49, %cst_31 {dimension_numbers = #tpu.dot_dimension_numbers<[1], [0], [0], [1], [0, 0, 1, 1], [], []>} : vector<8x32xf32>, vector<32x32xf32>, vector<8x32xf32> -> vector<8x32xf32>
    %51 = vector.extract_strided_slice %6 {offsets = [0, 160], sizes = [8, 32], strides = [1, 1]} : vector<8x192xf32> to vector<8x32xf32>
    %52 = arith.addf %50, %51 : vector<8x32xf32>
    %c0_32 = arith.constant 0 : index
    %c0_33 = arith.constant 0 : index
    %53 = vector.load %arg7[%c0_32, %c0_33] : memref<8x32xf32, #tpu.memory_space<vmem>>, vector<8x32xf32>
    tpu.vector_store %arg7[%c0_32, %c0_33], %52 {strides = array<i32>} : memref<8x32xf32, #tpu.memory_space<vmem>>, vector<8x32xf32>,
    return
  }
  func.func @transform_0(%arg0: i32) -> (i32, i32) {
    %c0_i32 = arith.constant 0 : i32
    %c0_i32_0 = arith.constant 0 : i32
    return %arg0, %c0_i32 : i32, i32
  }
  func.func @transform_1(%arg0: i32) -> (i32, i32) {
    %c0_i32 = arith.constant 0 : i32
    %c0_i32_0 = arith.constant 0 : i32
    return %arg0, %c0_i32 : i32, i32
  }
  func.func @transform_2(%arg0: i32) -> (i32, i32) {
    %c0_i32 = arith.constant 0 : i32
    %c0_i32_0 = arith.constant 0 : i32
    %c0_i32_1 = arith.constant 0 : i32
    return %c0_i32, %c0_i32_0 : i32, i32
  }
  func.func @transform_3(%arg0: i32) -> (i32, i32, i32) {
    %c0_i32 = arith.constant 0 : i32
    %c0_i32_0 = arith.constant 0 : i32
    %c0_i32_1 = arith.constant 0 : i32
    %c0_i32_2 = arith.constant 0 : i32
    return %c0_i32, %c0_i32_0, %c0_i32_1 : i32, i32, i32
  }
  func.func @transform_4(%arg0: i32) -> (i32, i32) {
    %c0_i32 = arith.constant 0 : i32
    %c0_i32_0 = arith.constant 0 : i32
    %c0_i32_1 = arith.constant 0 : i32
    return %c0_i32, %c0_i32_0 : i32, i32
  }
  func.func @transform_5(%arg0: i32) -> (i32, i32) {
    %c0_i32 = arith.constant 0 : i32
    %c0_i32_0 = arith.constant 0 : i32
    %c0_i32_1 = arith.constant 0 : i32
    return %c0_i32, %c0_i32_0 : i32, i32
  }
  func.func @transform_6(%arg0: i32) -> (i32, i32) {
    %c0_i32 = arith.constant 0 : i32
    %c0_i32_0 = arith.constant 0 : i32
    return %arg0, %c0_i32 : i32, i32
  }
}

</mosaic_0001>

<bundles_post_ra>
// kernel: tpu_custom_call.1
= control target key start
LH: loop header
LB: loop body
LE: loop exit
PB: predicated region body
PF: predicated region fallthrough
CT: control target
= control target key end

     0   :  { %11 = vsyncpa [#allocation3], 0  ;;  %s541_s0 = inlined_call_operand.vmem [shape: f32[8,32], index: 0, kind: input, shape index: {}]   ;;  %s542_s1 = inlined_call_operand.vmem [shape: f32[8,4], index: 1, kind: input, shape index: {}]   ;;  %s543_s2 = inlined_call_operand.hbm [shape: f32[32,32], index: 2, kind: input, shape index: {}]   ;;  %s544_s3 = inlined_call_operand.hbm [shape: f32[5,32,32], index: 3, kind: input, shape index: {}]   ;;  %s545_s4 = inlined_call_operand.hbm [shape: f32[4,192], index: 4, kind: input, shape index: {}]   ;;  %s546_s5 = inlined_call_operand.vmem [shape: f32[1,192], index: 5, kind: input, shape index: {}]   ;;  %s547_s6 = inlined_call_operand.hbm [shape: f32[8,32], index: 6, kind: output, shape index: {}]  }
   0x1   :  { %12 = vsyncpa [#allocation6], 0 }
   0x2   :  { %13 = vsyncpa [#allocation4], 0  ;;  %s35_s23 = sshll.u32 %s544_s3, 4  ;;  %s463_s24 = smov [#allocation5]   ;;  %s36_s23 = int_to_ptr.hbm [resolvable:$true] %s35_s23 }
   0x3   :  { %s37_s25 = sshll.u32 %s463_s24, 4  ;;  %s22_s28 = sshll.u32 %s543_s2, 4  ;;  %s38_s25 = int_to_ptr.vmem [resolvable:$true] %s37_s25  ;;  %s23_s28 = int_to_ptr.hbm [resolvable:$true] %s22_s28 }
   0x4   :  { %s464_s29 = smov 128   ;;  %s465_s30 = smov 8  }
   0x5   :  { %43 = dma.hbm_to_vmem [thread:$0]  %s36_s23, 2560, %s38_s25, [#allocation6], %s464_s29, %s464_s29, %s465_s30  }
   0x6   :  { %s466_s7 = smov [#allocation2]   ;;  %s49_s11 = sshll.u32 %s545_s4, 4  ;;  %s50_s11 = int_to_ptr.hbm [resolvable:$true] %s49_s11 }
   0x7   :  { %s24_s8 = sshll.u32 %s466_s7, 4  ;;  %s467_s3 = smov [#allocation7]   ;;  %s25_s8 = int_to_ptr.vmem [resolvable:$true] %s24_s8 }
   0x8   :  { %30 = dma.hbm_to_vmem [thread:$0]  %s23_s28, 512, %s25_s8, [#allocation3], %s464_s29, %s464_s29, %s465_s30  }
   0x9   :  { %s51_s12 = sshll.u32 %s467_s3, 4  ;;  %s52_s12 = int_to_ptr.vmem [resolvable:$true] %s51_s12 }
   0xa   :  { %54 = dma.hbm_to_vmem [thread:$0]  %s50_s11, 128, %s52_s12, [#allocation6]  }
   0xb   :  { %457 = dma.done.wait [#allocation3], 512  }
   0xc   :  { %458 = vsyncadd [#allocation3], 4294966784 }
   0xd   :  { %459 = dma.done.wait [#allocation6], 2688  }
   0xe   :  { %460 = vsyncadd [#allocation6], 4294964608  ;;  %v134_v0 = vld [vmem:[#allocation2 + $0x18] sm:$0xff]  ;;  %v133_v1 = vld [vmem:[#allocation2 + $0x10] sm:$0xff]  ;;  %vm135_vm0 = vcmask 261120   ;;  %vm86_vm1 = vcmask 1043456  }
   0xf   :  { %151 = vmatpush.msra.mxu2 %v134_v0  ;;  %v71_v2 = vld [vmem:[#allocation7] sm:$0xff]  ;;  %v132_v3 = vld [vmem:[#allocation2 + $0x8] sm:$0xff]  ;;  %v69_v5 = vld [vmem:[%s541_s0] sm:$0xff]  ;;  %vm82_vm2 = vcmask 31744   ;;  %s469_s16 = smov 32   ;;  %s470_s17 = smov 64  }
  0x10   :  { %79 = vst [vmem:[#allocation1] ss:$2 sm:$0xff] %v71_v2  ;;  %v131_v4 = vld [vmem:[#allocation2] sm:$0xff]  ;;  %v70_v6 = vld [vmem:[%s542_s1] sm:$0xff]  ;;  %v164_v9 = vld [vmem:[#allocation5 + $0x10] sm:$0xff]  ;;  %s468_s1 = smov 96  }
  0x11   :  { %152 = vmatpush.msra.mxu2 %v133_v1  ;;  %v165_v8 = vld [vmem:[#allocation5 + $0x18] sm:$0xff]  ;;  %v163_v10 = vld [vmem:[#allocation5 + $0x8] sm:$0xff]  ;;  %v162_v11 = vld [vmem:[#allocation5] sm:$0xff]  ;;  %s331_s21 = sshll.u32 %s547_s6, 4  ;;  %s332_s21 = int_to_ptr.hbm [resolvable:$true] %s331_s21 }
  0x12   :  { %185 = vmatpush.msra.mxu3 %v165_v8  ;;  %v72_v12 = vld [vmem:[%s546_s5] sm:$0x3]  ;;  %v199_v21 = vld [vmem:[#allocation5 + $0x30] sm:$0xff]  ;;  %v198_v22 = vld [vmem:[#allocation5 + $0x28] sm:$0xff]  ;;  %s471_s5 = smov [#allocation8]  }
  0x13   :  { %153 = vmatpush.msra.mxu2 %v132_v3  ;;  %v74_v13 = vperm.slane %v72_v12, 0  ;;  %v200_v20 = vld [vmem:[#allocation5 + $0x38] sm:$0xff]  ;;  %v197_v23 = vld [vmem:[#allocation5 + $0x20] sm:$0xff]  ;;  %v231_v26 = vld [vmem:[#allocation5 + $0x50] sm:$0xff]  ;;  %v75_v34 = vperm.slane %v72_v12, 1  ;;  %s329_s18 = sshll.u32 %s471_s5, 4  ;;  %s330_s18 = int_to_ptr.vmem [resolvable:$true] %s329_s18 }
  0x14   :  { %186 = vmatpush.msra.mxu3 %v164_v9  ;;  %v232_v25 = vld [vmem:[#allocation5 + $0x58] sm:$0xff]  ;;  %v230_v32 = vld [vmem:[#allocation5 + $0x48] sm:$0xff]  ;;  %v229_v33 = vld [vmem:[#allocation5 + $0x40] sm:$0xff] }
  0x15   :  { %154 = vmatpush.msra.mxu2 %v131_v4  ;;  %v266_v36 = vld [vmem:[#allocation5 + $0x78] sm:$0xff]  ;;  %v265_v42 = vld [vmem:[#allocation5 + $0x70] sm:$0xff]  ;;  %v264_v43 = vld [vmem:[#allocation5 + $0x68] sm:$0xff] }
  0x16   :  { %346 = vmatmul.msk.f32.vlgmr.msra.gmra.mxu2 %vm135_vm0, %v69_v5  ;;  %187 = vmatpush.msra.mxu3 %v163_v10  ;;  %v263_v44 = vld [vmem:[#allocation5 + $0x60] sm:$0xff]  ;;  %v295_v45 = vld [vmem:[#allocation5 + $0x98] sm:$0xff]  ;;  %v294_v46 = vld [vmem:[#allocation5 + $0x90] sm:$0xff] }
  0x17   :  { %v80_v7 = vld.sshfl [vmem:[#allocation1] sm:$0xff pattern:$0x75316420]  ;;  %v81_v24 = vld.sshfl [vmem:[#allocation1 + $0x8] sm:$0xff pattern:$0x75316420]  ;;  %282 = vmatpush.msrb.mxu2 %v266_v36 }
  0x18   :  { %342 = vmatpush.msk.msra.mxu0 %vm86_vm1, %v80_v7  ;;  %188 = vmatpush.msra.mxu3 %v162_v11  ;;  %v293_v52 = vld [vmem:[#allocation5 + $0x88] sm:$0xff]  ;;  %v292_v53 = vld [vmem:[#allocation5 + $0x80] sm:$0xff] }
  0x19   :  { %343 = vmatmul.msk.f32.vlgmr.msra.gmra.mxu0 %vm82_vm2, %v70_v6  ;;  %344 = vmatpush.msk.msra.mxu1 %vm86_vm1, %v81_v24 }
  0x1a   :  { %219 = vmatpush.msrb.mxu0 %v200_v20  ;;  %345 = vmatmul.msk.f32.vlgmr.msra.gmra.mxu1 %vm82_vm2, %v70_v6 }
  0x1b   :  { %251 = vmatpush.msrb.mxu1 %v232_v25  ;;  %283 = vmatpush.msrb.mxu2 %v265_v42 }
  0x1c   :  { %220 = vmatpush.msrb.mxu0 %v199_v21  ;;  %315 = vmatpush.msrb.mxu3 %v295_v45 }
  0x1d   :  { %252 = vmatpush.msrb.mxu1 %v231_v26  ;;  %284 = vmatpush.msrb.mxu2 %v264_v43 }
  0x1e   :  { %221 = vmatpush.msrb.mxu0 %v198_v22  ;;  %316 = vmatpush.msrb.mxu3 %v294_v46 }
  0x1f   :  { %253 = vmatpush.msrb.mxu1 %v230_v32  ;;  %285 = vmatpush.msrb.mxu2 %v263_v44 }
  0x20   :  { %222 = vmatpush.msrb.mxu0 %v197_v23  ;;  %317 = vmatpush.msrb.mxu3 %v293_v52 }
  0x21   :  { %254 = vmatpush.msrb.mxu1 %v229_v33 }
  0x22   :  { %318 = vmatpush.msrb.mxu3 %v292_v53 }
  0x96   :  { %v108_v14 = vpop.f32.mrf.mxu0 }
  0x97   :  { %v109_v15 = vadd.f32 %v108_v14, %v74_v13  ;;  %v128_v35 = vpop.f32.mrf.mxu1 }
  0x98   :  { %v129_v37 = vadd.f32 %v128_v35, %v75_v34 }
  0x99   :  { %167 = vrot.lane.b32.xlu0 %v109_v15, %s468_s1  ;;  %v156_v16 = vpop.f32.mrf.mxu2  ;;  %233 = vrot.lane.b32.xlu1 %v109_v15, %s469_s16 }
  0x9a   :  { %v157_v17 = vadd.f32 %v156_v16, %v109_v15 }
  0x9c   :  { %v160_v18 = vmul.f32 0.01, %v157_v17  ;;  %vm159_vm3 = vcmp.gt.f32.partialorder %v157_v17, 0.0 }
  0x9e   :  { %v161_v19 = vsel %vm159_vm3, %v157_v17, %v160_v18 }
  0x9f   :  { %347 = vmatmul.msk.f32.vlgmr.msra.gmra.mxu3 %vm135_vm0, %v161_v19 }
  0xa1   :  { %201 = vrot.lane.b32.xlu0 %v109_v15, %s470_s17  ;;  %297 = vrot.lane.b32.xlu1 %v129_v37, %s468_s1 }
 0x10b   :  { %v168_v27 = vpop.permute.xlu0 %167  ;;  %v234_v47 = vpop.permute.xlu1 %233 }
 0x113   :  { %v202_v38 = vpop.permute.xlu0 %201  ;;  %v298_v57 = vpop.permute.xlu1 %297 }
 0x122   :  { %v190_v28 = vpop.f32.mrf.mxu3 }
 0x123   :  { %v191_v29 = vadd.f32 %v190_v28, %v168_v27 }
 0x125   :  { %vm193_vm4 = vcmp.gt.f32.partialorder %v191_v29, 0.0  ;;  %v194_v30 = vmul.f32 0.01, %v191_v29 }
 0x127   :  { %v195_v31 = vsel %vm193_vm4, %v191_v29, %v194_v30 }
 0x128   :  { %348 = vmatmul.msk.f32.vlgmr.msrb.gmra.mxu0 %vm135_vm0, %v195_v31 }
 0x1a5   :  { %v224_v39 = vpop.f32.mrf.mxu0 }
 0x1a6   :  { %v225_v40 = vadd.f32 %v224_v39, %v202_v38 }
 0x1a8   :  { %v227_v41 = vadd.f32 %v225_v40, %v161_v19 }
 0x1aa   :  { %349 = vmatmul.msk.f32.vlgmr.msrb.gmra.mxu1 %vm135_vm0, %v227_v41 }
 0x227   :  { %v256_v48 = vpop.f32.mrf.mxu1 }
 0x228   :  { %v257_v49 = vadd.f32 %v256_v48, %v234_v47 }
 0x22a   :  { %vm259_vm5 = vcmp.gt.f32.partialorder %v257_v49, 0.0  ;;  %v260_v50 = vmul.f32 0.01, %v257_v49 }
 0x22c   :  { %v261_v51 = vsel %vm259_vm5, %v257_v49, %v260_v50 }
 0x22d   :  { %350 = vmatmul.msk.f32.vlgmr.msrb.gmra.mxu2 %vm135_vm0, %v261_v51 }
 0x2b0   :  { %v287_v54 = vpop.f32.mrf.mxu2 }
 0x2b1   :  { %v288_v55 = vadd.f32 %v287_v54, %v129_v37 }
 0x2b3   :  { %v290_v56 = vadd.f32 %v288_v55, %v227_v41 }
 0x2b5   :  { %351 = vmatmul.msk.f32.vlgmr.msrb.gmra.mxu3 %vm135_vm0, %v290_v56 }
 0x338   :  { %v320_v58 = vpop.f32.mrf.mxu3 }
 0x339   :  { %v321_v59 = vadd.f32 %v320_v58, %v298_v57 }
 0x33b   :  { %323 = vst.msk [vmem:[#allocation8] sm:$0xff] %vm135_vm0, %v321_v59 }
 0x33c   :  { %334 = dma.vmem_to_hbm [thread:$0]  %s330_s18, 128, %s332_s21, [#allocation4]  }
 0x33d   :  { %461 = dma.done.wait [#allocation4], 128  }
 0x33e   :  { %462 = vsyncadd [#allocation4], 4294967168 }
 0x33f   :  { %339 = vsyncpa [#allocation3], 1 }
 0x340   :  { %340 = vsyncpa [#allocation6], 1 }
 0x341   :  { %341 = vsyncpa [#allocation4], 1 }

</bundles_post_ra>
